<compile_context>
chip_gen: v6e
topology: v6e:2x2x1
jax: 0.10.0
libtpu: 0.0.40
codegen_flags: <defaults>
</compile_context>

<pallas_src>
import functools

import numpy as np
import jax
import jax.numpy as jnp
from jax.experimental import pallas as pl
from jax.experimental.pallas import tpu as pltpu


_BF16 = jnp.bfloat16
_VMEM_LIMIT = 32 * 1024 * 1024


def _round_up(x, m):
    return ((x + m - 1) // m) * m


def _divisor_tile(d, max_tile):
    for c in (1024, 512, 256, 128, 64, 32, 16, 8):
        if c <= max_tile and d % c == 0:
            return c
    return d


# ------------------------- Pallas kernels -------------------------

def _bmm_single_kernel(a_ref, b_ref, bias_ref, o_ref, *, act):
    """Full-K matmul tile with fused bias + activation.

    a: (1, tm, K), b: (1, K, tn), bias: (1, 1, tn) f32, o: (1, tm, tn).
    """
    acc = jnp.dot(a_ref[0], b_ref[0], preferred_element_type=jnp.float32)
    r = acc + bias_ref[0]
    if act == "relu":
        r = jnp.maximum(r, 0.0)
    elif act == "sigmoid":
        r = jax.nn.sigmoid(r)
    o_ref[0] = r.astype(o_ref.dtype)


def _bmm_acc_kernel(a_ref, b_ref, bias_ref, o_ref, acc_ref, *, act):
    """K-split variant (reduction on innermost grid axis). Used only for very large K."""
    @pl.when(pl.program_id(3) == 0)
    def _():
        acc_ref[...] = jnp.zeros_like(acc_ref)

    acc_ref[...] += jnp.dot(a_ref[0], b_ref[0], preferred_element_type=jnp.float32)

    @pl.when(pl.program_id(3) == pl.num_programs(3) - 1)
    def _():
        r = acc_ref[...] + bias_ref[0]
        if act == "relu":
            r = jnp.maximum(r, 0.0)
        elif act == "sigmoid":
            r = jax.nn.sigmoid(r)
        o_ref[0] = r.astype(o_ref.dtype)


def _bmm(a, b, bias, *, act, out_dtype=_BF16):
    """a: (G, M, K), b: (G, K, N), bias: (G, 1, N) f32 -> (G, M, N) out_dtype."""
    G, M, K = a.shape
    N = b.shape[2]

    # ---- M tile (only dim we ever pad; padded rows are sliced off below). ----
    if M % 256 == 0:
        tm, Mp = 256, M
    elif M % 128 == 0:
        tm, Mp = 128, M
    elif M <= 256:
        Mp = _round_up(M, 8)
        tm = Mp
    else:
        tm = 128
        Mp = _round_up(M, 128)
    if Mp != M:
        a = jnp.pad(a, ((0, 0), (0, Mp - M), (0, 0)))

    # ---- N tile: never pad (lane dim stays dense / full). ----
    if N <= 512:
        tn = N
    elif N % 256 == 0:
        tn = 256
    elif N % 128 == 0:
        tn = 128
    else:
        tn = N

    if K <= 4096:
        # Whole K resident in VMEM: single MXU pass, no accumulator traffic.
        grid = (G, Mp // tm, N // tn)
        out = pl.pallas_call(
            functools.partial(_bmm_single_kernel, act=act),
            out_shape=jax.ShapeDtypeStruct((G, Mp, N), out_dtype),
            grid_spec=pltpu.PrefetchScalarGridSpec(
                num_scalar_prefetch=0,
                grid=grid,
                in_specs=[
                    pl.BlockSpec((1, tm, K), lambda g, i, j: (g, i, 0)),
                    pl.BlockSpec((1, K, tn), lambda g, i, j: (g, 0, j)),
                    pl.BlockSpec((1, 1, tn), lambda g, i, j: (g, 0, j)),
                ],
                out_specs=pl.BlockSpec((1, tm, tn), lambda g, i, j: (g, i, j)),
            ),
            compiler_params=pltpu.CompilerParams(
                dimension_semantics=("parallel", "parallel", "parallel"),
                vmem_limit_bytes=_VMEM_LIMIT),
        )(a, b, bias)
    else:
        tk = 512
        Kp = _round_up(K, tk)
        if Kp != K:
            a = jnp.pad(a, ((0, 0), (0, 0), (0, Kp - K)))
            b = jnp.pad(b, ((0, 0), (0, Kp - K), (0, 0)))
        grid = (G, Mp // tm, N // tn, Kp // tk)
        out = pl.pallas_call(
            functools.partial(_bmm_acc_kernel, act=act),
            out_shape=jax.ShapeDtypeStruct((G, Mp, N), out_dtype),
            grid_spec=pltpu.PrefetchScalarGridSpec(
                num_scalar_prefetch=0,
                grid=grid,
                in_specs=[
                    pl.BlockSpec((1, tm, tk), lambda g, i, j, k: (g, i, k)),
                    pl.BlockSpec((1, tk, tn), lambda g, i, j, k: (g, k, j)),
                    pl.BlockSpec((1, 1, tn), lambda g, i, j, k: (g, 0, j)),
                ],
                out_specs=pl.BlockSpec((1, tm, tn), lambda g, i, j, k: (g, i, j)),
                scratch_shapes=[pltpu.VMEM((tm, tn), jnp.float32)],
            ),
            compiler_params=pltpu.CompilerParams(
                dimension_semantics=("parallel", "parallel", "parallel", "arbitrary"),
                vmem_limit_bytes=_VMEM_LIMIT),
        )(a, b, bias)

    if Mp != M:
        out = out[:, :M, :]
    return out


def _add_relu_kernel(a_ref, b_ref, o_ref):
    s = a_ref[...].astype(jnp.float32) + b_ref[...].astype(jnp.float32)
    o_ref[...] = jnp.maximum(s, 0.0).astype(o_ref.dtype)


@jax.jit
def add_relu(a, b):
    """Residual add + ReLU on channels-last tensors (lane dim = channels)."""
    shape = a.shape
    C = shape[-1]
    R = a.size // C
    a2 = a.reshape(R, C)
    b2 = b.reshape(R, C)
    max_rows = max(8, (512 * 1024) // (C * a.dtype.itemsize))
    tr = _divisor_tile(R, max_rows)
    out = pl.pallas_call(
        _add_relu_kernel,
        out_shape=jax.ShapeDtypeStruct((R, C), a.dtype),
        grid=(R // tr,),
        in_specs=[pl.BlockSpec((tr, C), lambda i: (i, 0)),
                  pl.BlockSpec((tr, C), lambda i: (i, 0))],
        out_specs=pl.BlockSpec((tr, C), lambda i: (i, 0)),
        compiler_params=pltpu.CompilerParams(
            dimension_semantics=("parallel",),
            vmem_limit_bytes=_VMEM_LIMIT),
    )(a2, b2)
    return out.reshape(shape)


def _mean_axis1_kernel(x_ref, o_ref):
    o_ref[...] = jnp.mean(x_ref[...].astype(jnp.float32), axis=1, keepdims=True)


@jax.jit
def mean_axis1(x):
    """(A, R, C) -> (A, C) f32 mean over the middle axis (GAP / projection mean)."""
    A, R, C = x.shape
    out = pl.pallas_call(
        _mean_axis1_kernel,
        out_shape=jax.ShapeDtypeStruct((A, 1, C), jnp.float32),
        grid=(A,),
        in_specs=[pl.BlockSpec((1, R, C), lambda i: (i, 0, 0))],
        out_specs=pl.BlockSpec((1, 1, C), lambda i: (i, 0, 0)),
        compiler_params=pltpu.CompilerParams(
            dimension_semantics=("parallel",),
            vmem_limit_bytes=_VMEM_LIMIT),
    )(x)
    return out.reshape(A, C)


# ------------------------- conv / linear wrappers (glue + Pallas matmul) -------------------------

def _im2col(x, kh, kw, stride, padding):
    """x: (N, H, W, C) -> patches (N, Ho, Wo, kh*kw, C)."""
    N, H, W, C = x.shape
    if padding:
        x = jnp.pad(x, ((0, 0), (padding, padding), (padding, padding), (0, 0)))
    Ho = (H + 2 * padding - kh) // stride + 1
    Wo = (W + 2 * padding - kw) // stride + 1
    cols = []
    for i in range(kh):
        for j in range(kw):
            cols.append(x[:, i:i + (Ho - 1) * stride + 1:stride,
                             j:j + (Wo - 1) * stride + 1:stride, :])
    return jnp.stack(cols, axis=3), Ho, Wo


@functools.partial(jax.jit, static_argnames=("act", "stride"))
def conv1x1(x, wm, b, *, act, stride=1):
    """x: (N,H,W,Cin) bf16; wm: (Cin, Cout) bf16; b: (Cout,) f32."""
    if stride > 1:
        x = x[:, ::stride, ::stride, :]
    N, H, W, Cin = x.shape
    Cout = wm.shape[1]
    a = x.reshape(N * H * W, Cin)
    out = _bmm(a[None], wm[None], b.reshape(1, 1, Cout), act=act)
    return out.reshape(N, H, W, Cout)


@functools.partial(jax.jit, static_argnames=("kh", "kw", "stride", "padding", "act"))
def conv_dense(x, wm, b, *, kh, kw, stride, padding, act):
    """Dense conv via im2col. wm: (kh*kw*Cin, Cout) bf16; b: (Cout,) f32."""
    N, H, W, Cin = x.shape
    Cout = wm.shape[1]
    patches, Ho, Wo = _im2col(x, kh, kw, stride, padding)       # (N,Ho,Wo,kk,Cin)
    a = patches.reshape(N * Ho * Wo, kh * kw * Cin)
    out = _bmm(a[None], wm[None], b.reshape(1, 1, Cout), act=act)
    return out.reshape(N, Ho, Wo, Cout)


@functools.partial(jax.jit,
                   static_argnames=("kh", "kw", "stride", "padding", "pack", "cin_g", "act"))
def conv_grouped_packed(x, bd, bias, *, kh, kw, stride, padding, pack, cin_g, act):
    """Grouped conv with groups packed into 128-wide super-groups (block-diagonal weight).

    x: (N,H,W,Cin) bf16; bd: (SG, kh*kw*pack*cin_g, pack*cout_g) bf16;
    bias: (SG, 1, pack*cout_g) f32.
    """
    N, H, W, Cin = x.shape
    SG = bd.shape[0]
    csg_in = pack * cin_g
    csg_out = bd.shape[2]
    patches, Ho, Wo = _im2col(x, kh, kw, stride, padding)       # (N,Ho,Wo,kk,Cin)
    M = N * Ho * Wo
    a = patches.reshape(N, Ho, Wo, kh * kw, SG, csg_in)
    a = a.transpose(4, 0, 1, 2, 3, 5).reshape(SG, M, kh * kw * csg_in)
    out = _bmm(a, bd, bias, act=act)                            # (SG, M, csg_out)
    out = out.reshape(SG, N, Ho, Wo, csg_out).transpose(1, 2, 3, 0, 4)
    return out.reshape(N, Ho, Wo, SG * csg_out)


@functools.partial(jax.jit, static_argnames=("act",))
def linear(x, wm, b, *, act):
    """x: (B, in) f32; wm: (in, out) f32; b: (out,) f32  (PyTorch nn.Linear semantics)."""
    out = _bmm(x[None], wm[None], b.reshape(1, 1, -1), act=act, out_dtype=jnp.float32)
    return out[0]


# ------------------------- deterministic parameter construction -------------------------

class ParamGen:
    def __init__(self, seed):
        self.key = jax.random.PRNGKey(seed)

    def next(self):
        self.key, sub = jax.random.split(self.key)
        return sub


def _conv_weight(pg, cout, cin_g, kh, kw):
    fan_in = cin_g * kh * kw
    return (jax.random.normal(pg.next(), (cout, cin_g, kh, kw), jnp.float32)
            * np.sqrt(2.0 / fan_in) * 0.5)


def _folded_bn(pg, c):
    gamma = 1.0 + 0.1 * jax.random.normal(pg.next(), (c,), jnp.float32)
    beta = 0.1 * jax.random.normal(pg.next(), (c,), jnp.float32)
    mean = 0.1 * jax.random.normal(pg.next(), (c,), jnp.float32)
    var = jnp.abs(1.0 + 0.1 * jax.random.normal(pg.next(), (c,), jnp.float32))
    scale = gamma / jnp.sqrt(var + 1e-5)
    shift = beta - mean * scale
    return scale, shift


def _conv_bn(pg, cin, cout, kh, kw, groups=1):
    w = _conv_weight(pg, cout, cin // groups, kh, kw)
    scale, shift = _folded_bn(pg, cout)
    return w * scale[:, None, None, None], shift


def _pack_1x1(w, b):
    """(Cout, Cin, 1, 1) -> matmul-ready ((Cin, Cout) bf16, bias f32)."""
    cout, cin = w.shape[0], w.shape[1]
    return jnp.transpose(w.reshape(cout, cin)).astype(_BF16), b.astype(jnp.float32)


def _pack_dense(w, b):
    """(Cout, Cin, kh, kw) -> ((kh*kw*Cin, Cout) bf16, bias f32); K order = (kh, kw, cin)."""
    cout, cin, kh, kw = w.shape
    wm = w.transpose(2, 3, 1, 0).reshape(kh * kw * cin, cout)
    return wm.astype(_BF16), b.astype(jnp.float32)


def _pack_grouped(w, b, groups):
    """Grouped conv -> block-diagonal super-group weights.

    Returns (bd (SG, kh*kw*pack*cin_g, pack*cout_g) bf16, bias (SG,1,pack*cout_g) f32,
    pack, cin_g) where pack groups are fused so the output lane dim is ~128 wide.
    """
    cout, cin_g, kh, kw = w.shape
    cout_g = cout // groups
    pack = max(1, min(groups, 128 // max(cout_g, 1)))
    while groups % pack != 0:
        pack -= 1
    sg = groups // pack
    w_r = w.reshape(sg, pack, cout_g, cin_g, kh, kw)
    w_perm = w_r.transpose(0, 4, 5, 1, 3, 2).reshape(sg, kh * kw, pack, cin_g, cout_g)
    eye = jnp.eye(pack, dtype=w.dtype)
    bd = jnp.einsum('skpic,pq->skpiqc', w_perm, eye)
    bd = bd.reshape(sg, kh * kw * pack * cin_g, pack * cout_g).astype(_BF16)
    bias = b.reshape(sg, 1, pack * cout_g).astype(jnp.float32)
    return bd, bias, pack, cin_g


def _make_bottleneck(pg, inplanes, planes, stride, groups=32, base_width=4):
    width = int(planes * (base_width / 64.0)) * groups
    p = {"stride": stride}
    w1, b1 = _conv_bn(pg, inplanes, width, 1, 1)
    p["w1"], p["b1"] = _pack_1x1(w1, b1)
    w2, b2 = _conv_bn(pg, width, width, 3, 3, groups=groups)
    p["w2"], p["b2"], p["pack"], p["cin_g"] = _pack_grouped(w2, b2, groups)
    w3, b3 = _conv_bn(pg, width, planes * 4, 1, 1)
    p["w3"], p["b3"] = _pack_1x1(w3, b3)
    if stride != 1 or inplanes != planes * 4:
        wd, bdn = _conv_bn(pg, inplanes, planes * 4, 1, 1)
        p["wd"], p["bd"] = _pack_1x1(wd, bdn)
    return p


def _make_backbone(pg):
    """resnext50_32x4d topology (conv1 + layer1..layer4; fc.in_features == 2048)."""
    w1 = _conv_weight(pg, 64, 3, 7, 7)                    # conv1 has no bias
    conv1_w, conv1_b = _pack_dense(w1, jnp.zeros((64,), jnp.float32))
    params = {"conv1_w": conv1_w, "conv1_b": conv1_b, "blocks": []}
    inplanes = 64
    for planes, nblocks, stride in [(64, 3, 1), (128, 4, 2), (256, 6, 2), (512, 3, 2)]:
        for bi in range(nblocks):
            params["blocks"].append(
                _make_bottleneck(pg, inplanes, planes, stride if bi == 0 else 1))
            inplanes = planes * 4
    return params


def _make_head(pg, hp):
    conv_sizes = [2048] + [hp["n_conv_neurons"]] * hp["n_conv_layers"]
    k = hp["kernel_size"]
    head = {"kernel_size": k, "n_conv": len(conv_sizes) - 1, "ll": [], "ap": []}
    for i in range(len(conv_sizes) - 1):
        for name in ("ll", "ap"):
            w = _conv_weight(pg, conv_sizes[i + 1], conv_sizes[i], k, k)
            b = 0.01 * jax.random.normal(pg.next(), (conv_sizes[i + 1],), jnp.float32)
            head[name].append(_pack_1x1(w, b) if k == 1 else _pack_dense(w, b))
    head["ap_weight"] = jax.random.normal(pg.next(), (1,), jnp.float32)  # unused in output
    fc_sizes = [conv_sizes[-1]] * hp["n_fc_layers"]
    fcs = []
    for i in range(len(fc_sizes)):
        out_dim = 1 if i == len(fc_sizes) - 1 else fc_sizes[i + 1]
        w = (jax.random.normal(pg.next(), (out_dim, fc_sizes[i]), jnp.float32)
             * np.sqrt(1.0 / fc_sizes[i]))
        b = 0.01 * jax.random.normal(pg.next(), (out_dim,), jnp.float32)
        fcs.append((jnp.transpose(w), b))                 # store as (in, out) f32
    head["fc"] = fcs
    return head


# ------------------------- forward pass -------------------------

def bottleneck_forward(x, p):
    out = conv1x1(x, p["w1"], p["b1"], act="relu")
    out = conv_grouped_packed(out, p["w2"], p["b2"], kh=3, kw=3,
                              stride=p["stride"], padding=1,
                              pack=p["pack"], cin_g=p["cin_g"], act="relu")
    out = conv1x1(out, p["w3"], p["b3"], act="none")
    if "wd" in p:
        identity = conv1x1(x, p["wd"], p["bd"], act="none", stride=p["stride"])
    else:
        identity = x
    return add_relu(out, identity)


def forward(backbone, head, projections, projection_types):
    """projections: (B, P, H, W) float32; projection_types: (B, P) int (1 == AP)."""
    B, P, H, W = projections.shape

    # Fold projections into the batch dim; run the backbone once on (B*P, H, W, 3) NHWC.
    x = projections.astype(_BF16).reshape(B * P, H, W)
    x = jnp.stack([x, x, x], axis=-1)                                  # (B*P, H, W, 3)
    x = conv_dense(x, backbone["conv1_w"], backbone["conv1_b"],
                   kh=7, kw=7, stride=2, padding=3, act="none")        # conv1 (bn1/relu/maxpool skipped)
    for p in backbone["blocks"]:
        x = bottleneck_forward(x, p)                                   # layer1..layer4
    feat = x                                                           # (B*P, h, w, 2048)

    # Run BOTH head branches over the full folded batch; select per element afterwards.
    k = head["kernel_size"]
    ap_out, ll_out = feat, feat
    for j in range(head["n_conv"]):
        wa, ba = head["ap"][j]
        wl, bl = head["ll"][j]
        if k == 1:
            ap_out = conv1x1(ap_out, wa, ba, act="relu")
            ll_out = conv1x1(ll_out, wl, bl, act="relu")
        else:
            ap_out = conv_dense(ap_out, wa, ba, kh=k, kw=k, stride=1, padding=0, act="relu")
            ll_out = conv_dense(ll_out, wl, bl, kh=k, kw=k, stride=1, padding=0, act="relu")

    def _gap(t):                                                       # AdaptiveAvgPool2d(1)+flatten
        nb, hh, ww, c = t.shape
        return mean_axis1(t.reshape(nb, hh * ww, c))                   # (nb, c) f32

    C = ap_out.shape[-1]
    ap_gap = _gap(ap_out).reshape(B, P, C)
    ll_gap = _gap(ll_out).reshape(B, P, C)

    # Reference: per projection, concat AP-first then LL (batch re-ordered), GAP, then
    # mean over projections.  Reproduce exactly via a per-projection permutation + select.
    types_np = np.asarray(projection_types)
    per_proj = []
    for i in range(P):
        is_ap = types_np[:, i] == 1
        perm = np.concatenate([np.nonzero(is_ap)[0], np.nonzero(~is_ap)[0]]).astype(np.int32)
        sel = is_ap[perm]
        ap_i = jnp.take(ap_gap[:, i, :], jnp.asarray(perm), axis=0)
        ll_i = jnp.take(ll_gap[:, i, :], jnp.asarray(perm), axis=0)
        per_proj.append(jnp.where(jnp.asarray(sel)[:, None], ap_i, ll_i))
    stacked = jnp.stack(per_proj, axis=1)                              # (B, P, C)
    out = mean_axis1(stacked)                                          # mean over projections

    # NOTE: `ap_weight` only touches the discarded output_ordered_list in the reference.
    fcs = head["fc"]
    for i, (wm, b) in enumerate(fcs):
        act = "relu" if i != len(fcs) - 1 else "sigmoid"               # final: Linear(.,1)+sigmoid
        out = linear(out, wm, b, act=act)
    return out


# ------------------------- main -------------------------

if __name__ == "__main__":
    hyper = {"n_conv_neurons": 32, "n_conv_layers": 2, "kernel_size": 1, "n_fc_layers": 2}

    pg = ParamGen(0)
    backbone = _make_backbone(pg)
    head = _make_head(pg, hyper)

    B, P, H, W = 2, 2, 32, 32
    k1, k2 = jax.random.split(jax.random.PRNGKey(0))
    projections = jax.random.normal(k1, (B, P, H, W), jnp.float32)
    projection_types = jax.random.randint(k2, (B, P), 0, 2)   # 1 == ProjectionType.AP, 0 == LL

    out = forward(backbone, head, projections, projection_types)
    out = jax.block_until_ready(out)
    assert out.shape == (B, 1), out.shape
    assert bool(jnp.all(jnp.isfinite(out)))
    print("KERNEL_OK")
</pallas_src>

<mosaic_0001>
module attributes {stable_mosaic.version = 11 : i64} {
  func.func @_bmm_single_kernel(%arg0: i32, %arg1: i32, %arg2: i32, %arg3: memref<1x256x147xbf16, #tpu.memory_space<vmem>>, %arg4: memref<1x147x64xbf16, #tpu.memory_space<vmem>>, %arg5: memref<1x1x64xf32, #tpu.memory_space<vmem>>, %arg6: memref<1x256x64xbf16, #tpu.memory_space<vmem>>) attributes {dimension_semantics = [#tpu.dimension_semantics<parallel>, #tpu.dimension_semantics<parallel>, #tpu.dimension_semantics<parallel>], iteration_bounds = array<i64: 1, 4, 1>, scalar_prefetch = 0 : i64, scratch_operands = 0 : i64, tpu.core_type = #tpu.core_type<tc>, window_params = [{transform_indices = @transform_0, window_bounds = array<i64: 1, 256, 147>}, {transform_indices = @transform_1, window_bounds = array<i64: 1, 147, 64>}, {transform_indices = @transform_2, window_bounds = array<i64: 1, 1, 64>}, {transform_indices = @transform_3, window_bounds = array<i64: 1, 256, 64>}]} {
    %c0 = arith.constant 0 : index
    %c0_0 = arith.constant 0 : index
    %c0_1 = arith.constant 0 : index
    %0 = vector.load %arg3[%c0, %c0_0, %c0_1] : memref<1x256x147xbf16, #tpu.memory_space<vmem>>, vector<1x256x147xbf16>
    %1 = vector.shape_cast %0 : vector<1x256x147xbf16> to vector<256x147xbf16>
    %c0_2 = arith.constant 0 : index
    %c0_3 = arith.constant 0 : index
    %c0_4 = arith.constant 0 : index
    %2 = vector.load %arg4[%c0_2, %c0_3, %c0_4] : memref<1x147x64xbf16, #tpu.memory_space<vmem>>, vector<1x147x64xbf16>
    %3 = vector.shape_cast %2 : vector<1x147x64xbf16> to vector<147x64xbf16>
    %cst = arith.constant dense<0.000000e+00> : vector<256x64xf32>
    %4 = tpu.matmul %1, %3, %cst {dimension_numbers = #tpu.dot_dimension_numbers<[1], [0], [0], [1], [0, 0, 1, 1], [], []>} : vector<256x147xbf16>, vector<147x64xbf16>, vector<256x64xf32> -> vector<256x64xf32>
    %c0_5 = arith.constant 0 : index
    %c0_6 = arith.constant 0 : index
    %c0_7 = arith.constant 0 : index
    %5 = vector.load %arg5[%c0_5, %c0_6, %c0_7] : memref<1x1x64xf32, #tpu.memory_space<vmem>>, vector<1x1x64xf32>
    %6 = vector.shape_cast %5 : vector<1x1x64xf32> to vector<1x64xf32>
    %7 = vector.broadcast %6 : vector<1x64xf32> to vector<256x64xf32>
    %8 = arith.addf %4, %7 : vector<256x64xf32>
    %9 = arith.truncf %8 : vector<256x64xf32> to vector<256x64xbf16>
    %c0_8 = arith.constant 0 : index
    %c0_9 = arith.constant 0 : index
    %c0_10 = arith.constant 0 : index
    %10 = vector.load %arg6[%c0_8, %c0_9, %c0_10] : memref<1x256x64xbf16, #tpu.memory_space<vmem>>, vector<1x256x64xbf16>
    %11 = vector.shape_cast %10 : vector<1x256x64xbf16> to vector<256x64xbf16>
    %12 = vector.shape_cast %9 : vector<256x64xbf16> to vector<1x256x64xbf16>
    tpu.vector_store %arg6[%c0_8, %c0_9, %c0_10], %12 {strides = array<i32>} : memref<1x256x64xbf16, #tpu.memory_space<vmem>>, vector<1x256x64xbf16>,
    return
  }
  func.func @transform_0(%arg0: i32, %arg1: i32, %arg2: i32) -> (i32, i32, i32) {
    %c0_i32 = arith.constant 0 : i32
    %c0_i32_0 = arith.constant 0 : i32
    return %arg0, %arg1, %c0_i32 : i32, i32, i32
  }
  func.func @transform_1(%arg0: i32, %arg1: i32, %arg2: i32) -> (i32, i32, i32) {
    %c0_i32 = arith.constant 0 : i32
    %c0_i32_0 = arith.constant 0 : i32
    return %arg0, %c0_i32, %arg2 : i32, i32, i32
  }
  func.func @transform_2(%arg0: i32, %arg1: i32, %arg2: i32) -> (i32, i32, i32) {
    %c0_i32 = arith.constant 0 : i32
    %c0_i32_0 = arith.constant 0 : i32
    return %arg0, %c0_i32, %arg2 : i32, i32, i32
  }
  func.func @transform_3(%arg0: i32, %arg1: i32, %arg2: i32) -> (i32, i32, i32) {
    %c0_i32 = arith.constant 0 : i32
    return %arg0, %arg1, %arg2 : i32, i32, i32
  }
}

</mosaic_0001>

<bundles_post_ra>
// kernel: conv_dense.1
= control target key start
LH: loop header
LB: loop body
LE: loop exit
PB: predicated region body
PF: predicated region fallthrough
CT: control target
= control target key end

     0   :  { %8 = vsyncpa [#allocation3], 0  ;;  %s1727_s0 = inlined_call_operand.vmem [shape: bf16[1,1024,147], index: 0, kind: input, shape index: {}]   ;;  %s1728_s1 = inlined_call_operand.vmem [shape: bf16[1,147,64], index: 1, kind: input, shape index: {}]   ;;  %s1729_s2 = inlined_call_operand.vmem [shape: f32[1,1,64], index: 2, kind: input, shape index: {}]   ;;  %s1730_s3 = inlined_call_operand.hbm [shape: bf16[1,1024,64], index: 3, kind: output, shape index: {}]  }
   0x1   :  { %10 = vsyncpa [#allocation3 + $0x1], 0  ;;  %s1426_s12 = smov 0   ;;  %s1428_s13 = smov 0  }
   0x2   :  { %s1430_s14 = smov 0   ;;  %s1432_s15 = smov 0  }
   0x3   :  { %s1434_s16 = smov 0   ;;  %s1436_s17 = smov 0  }
   0x4 LB: > { %s1045_s18 = sadd.s32 4294967295, %s1399_s17   ;;  %s1046_s19 = sadd.s32 4294967294, %s1399_s17   ;;  %s1399_s17 = sphi %s1436_s17, %s16_s17   ;;  %s1395_s16 = sphi %s1434_s16, %s1737_s16   ;;  %s1391_s15 = sphi %s1432_s15, %s1736_s15   ;;  %s1387_s14 = sphi %s1430_s14, %s1735_s14   ;;  %s1383_s13 = sphi %s1428_s13, %s1734_s13   ;;  %s1379_s12 = sphi %s1426_s12, %s1733_s12  }
   0x5   : > { %s31_s20 = sadd.s32 1, %s1395_s16  ;;  %s130_s21 = sadd.s32 1, %s1387_s14 }
   0x6   : > { %p33_p0 = scmp.ge.s32.totalorder %s31_s20, 4  ;;  %p140_p1 = scmp.ne.s32.totalorder %s1387_s14, %s1383_s13 }
   0x7   : > { %p141_p2 = scmp.eq.s32.totalorder %s1045_s18, 3  ;;  %p146_p3 = scmp.ne.s32.totalorder %s1383_s13, %s1379_s12 }
   0x8   : > { %s1739_s20 = smov (%p33_p0, %s31_s20), 0  ;;  %p147_p5 = scmp.eq.s32.totalorder %s1046_s19, 3 }
   0x9   : > { %p1466_p4 = por %p141_p2, %p140_p1  ;;  %s124_s23 = ssub.s32 %s1395_s16, %s1739_s20 }
   0xa   : > { %p1051_p6 = scmp.ge.s32.totalorder %s1399_s17, 1  ;;  %p128_p7 = scmp.eq.s32.totalorder %s124_s23, 0 }
   0xb   : > { %p1473_p8 = por %p147_p5, %p146_p3  ;;  %p199_p9 = scmp.lt.s32.totalorder %s1399_s17, 5 }
   0xc   : > { %s1479_s25 = scalar_select %p128_p7, %s1387_s14, %s130_s21  }
   0xd   : > { %p200_p10 = pnand %p1051_p6, %p199_p9 }
   0xe   : > { %s1053_s5 = sshll.u32 (!%p200_p10), %s1391_s15, 5  ;;  %s239_s7 = sand.u32 (!%p200_p10), 1, %s1383_s13  }
   0xf   : > { %203 = sbr.rel (%p200_p10) target bundleno = 332 (0x14c), region = 32  ;;  %p245_p11 = scmp.lt.s32.totalorder (!%p200_p10), %s1053_s5, 127 }
  0x10   : > { %s1052_s10 = sshll.u32 (!%p200_p10), %s239_s7, 7  ;;  %s1185_s18 = sshll.u32 (!%p200_p10), %s1391_s15, 11 }
  0x11   : > { %s1672_s26 = scalar_lea.hbm (!%p200_p10), %s1730_s3, %s1185_s18  ;;  %s1682_s15 = scalar_lea.sflag (!%p200_p10), [#allocation3], %s239_s7 }
  0x12   : > { %s1403_s28 = smov (!%p200_p10), [#allocation2]  }
  0x13   : > { %s1327_s29 = sshll.u32 (!%p200_p10), %s1403_s28, 4  ;;  %s1328_s29 = int_to_ptr.vmem [resolvable:$false] %s1327_s29 }
  0x14   : > { %v1265_v0 = vld [vmem:[%s1728_s1 + $0x38] sm:$0xff]   ;;  %v1401_v1 = vmov 0   ;;  %v1266_v2 = vld [vmem:[%s1728_s1 + $0x30] sm:$0xff]   ;;  %v1267_v3 = vld [vmem:[%s1728_s1 + $0x28] sm:$0xff]   ;;  %s1741_s5 = smov (!%p245_p11, %s1053_s5), 127  ;;  %vm528_vm0 = vcmask 154624  }
  0x15   : > { %584 = vmatprep.subr.bf16.mxu0 %v1401_v1  ;;  %1186 = vmatprep.subr.bf16.mxu1 %v1401_v1  ;;  %v1268_v4 = vld [vmem:[%s1728_s1 + $0x20] sm:$0xff]   ;;  %s1152_s8 = sshll.u32 %s1741_s5, 3  ;;  %v1269_v5 = vld [vmem:[%s1728_s1 + $0x18] sm:$0xff]   ;;  %v1270_v8 = vld [vmem:[%s1728_s1 + $0x10] sm:$0xff]   ;;  %vm577_vm1 = vcmask 1040384   ;;  %vm578_vm2 = vcmask 1041408  }
  0x16   : > { %585 = vmatpush1.bf16.msra.mxu0 %v1265_v0  ;;  %1196 = vmatpush1.bf16.msra.mxu1 %v1265_v0  ;;  %s1497_s11 = scalar_lea.vmem %s1727_s0, %s1152_s8  ;;  %v1271_v9 = vld [vmem:[%s1728_s1 + $0x8] sm:$0xff]   ;;  %v1402_v10 = vmov 65535   ;;  %v1272_v12 = vld [vmem:[%s1728_s1] sm:$0xff]   ;;  %vm873_vm3 = vcmask 519168   ;;  %s1329_s30 = scalar_lea.vmem %s1328_s29, 4096 }
  0x17   : > { %586 = vmatprep.subr.bf16.mxu0 %v1401_v1  ;;  %1187 = vmatprep.subr.bf16.mxu1 %v1401_v1  ;;  %v1277_v6 = vld [vmem:[%s1497_s11 + $0x4] ss:$8 sps:$4 sm:$0xff]   ;;  %v579_v11 = vsel %vm577_vm1, 4294967295, %v1402_v10  ;;  %v1273_v13 = vld [vmem:[%s1728_s1 + $0x48] ss:$0 sps:$4 sm:$0x33]  }
  0x18   : > { %v1280_v7 = vld [vmem:[%s1497_s11 + $0x84] ss:$8 sps:$4 sm:$0xff]   ;;  %1099 = vmatprep.mubr.msk.bf16.mxu0 %vm528_vm0, %v1277_v6  ;;  %v580_v14 = vsel %vm578_vm2, %v579_v11, 0  ;;  %v1275_v17 = vld [vmem:[%s1497_s11] ss:$8 sps:$4 sm:$0xff]  }
  0x19   : > { %1107 = vmatprep.mubr.msk.bf16.mxu1 %vm528_vm0, %v1280_v7  ;;  %v582_v15 = vand.u32 %v1273_v13, %v580_v14  ;;  %v1274_v16 = vld [vmem:[%s1728_s1 + $0x40] sm:$0xff]   ;;  %v1281_v19 = vld [vmem:[%s1497_s11 + $0x14] ss:$8 sps:$4 sm:$0xff]   ;;  %v1285_v21 = vld [vmem:[%s1497_s11 + $0x10] ss:$8 sps:$4 sm:$0xff]  }
  0x1a   : > { %587 = vmatpush1.bf16.msra.mxu0 %v1266_v2  ;;  %1197 = vmatpush1.bf16.msra.mxu1 %v1266_v2  ;;  %v1278_v18 = vld [vmem:[%s1497_s11 + $0x80] ss:$8 sps:$4 sm:$0xff]   ;;  %v1283_v20 = vld [vmem:[%s1497_s11 + $0x94] ss:$8 sps:$4 sm:$0xff]   ;;  %v1286_v22 = vld [vmem:[%s1497_s11 + $0x90] ss:$8 sps:$4 sm:$0xff]  }
  0x1b   : > { %588 = vmatprep.subr.bf16.mxu0 %v1401_v1  ;;  %1188 = vmatprep.subr.bf16.mxu1 %v1401_v1  ;;  %v1287_v23 = vld [vmem:[%s1497_s11 + $0x24] ss:$8 sps:$4 sm:$0xff]   ;;  %v1291_v25 = vld [vmem:[%s1497_s11 + $0x20] ss:$8 sps:$4 sm:$0xff]   ;;  %v1293_v27 = vld [vmem:[%s1497_s11 + $0x34] ss:$8 sps:$4 sm:$0xff]  }
  0x1c   : > { %v1289_v24 = vld [vmem:[%s1497_s11 + $0xa4] ss:$8 sps:$4 sm:$0xff]   ;;  %v1292_v26 = vld [vmem:[%s1497_s11 + $0xa0] ss:$8 sps:$4 sm:$0xff]   ;;  %v1295_v28 = vld [vmem:[%s1497_s11 + $0xb4] ss:$8 sps:$4 sm:$0xff]  }
  0x1d   : > { %v1297_v29 = vld [vmem:[%s1497_s11 + $0x30] ss:$8 sps:$4 sm:$0xff]   ;;  %v1299_v31 = vld [vmem:[%s1497_s11 + $0x44] ss:$8 sps:$4 sm:$0xff]   ;;  %v1303_v33 = vld [vmem:[%s1497_s11 + $0x40] ss:$8 sps:$4 sm:$0xff]  }
  0x1e   : > { %589 = vmatpush1.bf16.msra.mxu0 %v1267_v3  ;;  %1198 = vmatpush1.bf16.msra.mxu1 %v1267_v3  ;;  %v1298_v30 = vld [vmem:[%s1497_s11 + $0xb0] ss:$8 sps:$4 sm:$0xff]   ;;  %v1301_v32 = vld [vmem:[%s1497_s11 + $0xc4] ss:$8 sps:$4 sm:$0xff]   ;;  %v1304_v34 = vld [vmem:[%s1497_s11 + $0xc0] ss:$8 sps:$4 sm:$0xff]  }
  0x1f   : > { %590 = vmatprep.subr.bf16.mxu0 %v1401_v1  ;;  %1189 = vmatprep.subr.bf16.mxu1 %v1401_v1  ;;  %v1305_v35 = vld [vmem:[%s1497_s11 + $0x54] ss:$8 sps:$4 sm:$0xff]   ;;  %v1309_v37 = vld [vmem:[%s1497_s11 + $0x50] ss:$8 sps:$4 sm:$0xff]   ;;  %v1311_v39 = vld [vmem:[%s1497_s11 + $0x64] ss:$8 sps:$4 sm:$0xff]  }
  0x20   : > { %v1307_v36 = vld [vmem:[%s1497_s11 + $0xd4] ss:$8 sps:$4 sm:$0xff]   ;;  %v1310_v38 = vld [vmem:[%s1497_s11 + $0xd0] ss:$8 sps:$4 sm:$0xff]   ;;  %v1313_v40 = vld [vmem:[%s1497_s11 + $0xe4] ss:$8 sps:$4 sm:$0xff]  }
  0x21   : > { %v1315_v41 = vld [vmem:[%s1497_s11 + $0x60] ss:$8 sps:$4 sm:$0xff]   ;;  %v1317_v43 = vld [vmem:[%s1497_s11 + $0x74] ss:$8 sps:$4 sm:$0xff]   ;;  %v1321_v45 = vld [vmem:[%s1497_s11 + $0x70] ss:$8 sps:$4 sm:$0xff]  }
  0x22   : > { %591 = vmatpush1.bf16.msra.mxu0 %v1268_v4  ;;  %1199 = vmatpush1.bf16.msra.mxu1 %v1268_v4  ;;  %v1316_v42 = vld [vmem:[%s1497_s11 + $0xe0] ss:$8 sps:$4 sm:$0xff]   ;;  %v1319_v44 = vld [vmem:[%s1497_s11 + $0xf4] ss:$8 sps:$4 sm:$0xff]   ;;  %v1322_v46 = vld [vmem:[%s1497_s11 + $0xf0] ss:$8 sps:$4 sm:$0xff]  }
  0x23   : > { %592 = vmatprep.subr.bf16.mxu0 %v1401_v1  ;;  %1190 = vmatprep.subr.bf16.mxu1 %v1401_v1  ;;  %v1569_v47 = vld [vmem:[%s1729_s2] ss:$0 sm:$0xff]  ;;  %s1575_s11 = scalar_lea.vmem [#allocation2], %s1052_s10 }
  0x24   : > { %s923_s19 = sshll.u32 %s1575_s11, 4  ;;  %s1674_s19 = int_to_ptr.vmem [resolvable:$true] %s923_s19 }
  0x25   : > { %s1323_s27 = scalar_lea.vmem %s1674_s19, 2048  ;;  %p1330_p1 = scmp.lt.s32.totalorder %s1674_s19, %s1328_s29 }
  0x26   : > { %593 = vmatpush1.bf16.msra.mxu0 %v1269_v5  ;;  %1200 = vmatpush1.bf16.msra.mxu1 %v1269_v5  ;;  %p1324_p12 = scmp.ne.s32.totalorder %s1674_s19, %s1323_s27  ;;  %p1331_p2 = scmp.lt.s32.totalorder %s1329_s30, %s1323_s27 }
  0x27   : > { %594 = vmatprep.subr.bf16.mxu0 %v1401_v1  ;;  %1191 = vmatprep.subr.bf16.mxu1 %v1401_v1 }
  0x28   : > { %p1325_p13 = pnand %p1324_p12, %p1466_p4  ;;  %p1332_p3 = por %p1331_p2, %p1330_p1 }
  0x2a   : > { %595 = vmatpush1.bf16.msra.mxu0 %v1270_v8  ;;  %1201 = vmatpush1.bf16.msra.mxu1 %v1270_v8  ;;  %p1326_p0 = pneg %p1325_p13 }
  0x2b   : > { %596 = vmatprep.subr.bf16.mxu0 %v1401_v1  ;;  %1192 = vmatprep.subr.bf16.mxu1 %v1401_v1 }
  0x2c   : > { %p1333_p5 = pnand %p1332_p3, %p1326_p0 }
  0x2e   : > { %597 = vmatpush1.bf16.msra.mxu0 %v1271_v9  ;;  %1202 = vmatpush1.bf16.msra.mxu1 %v1271_v9 }
  0x2f   : > { %598 = vmatprep.subr.bf16.mxu0 %v1401_v1  ;;  %1193 = vmatprep.subr.bf16.mxu1 %v1401_v1 }
  0x32   : > { %599 = vmatpush1.bf16.msra.mxu0 %v1272_v12  ;;  %1203 = vmatpush1.bf16.msra.mxu1 %v1272_v12 }
  0x33   : > { %612 = vmatprep.subr.bf16.mxu0 %v1401_v1  ;;  %1194 = vmatprep.subr.bf16.mxu1 %v1401_v1 }
  0x36   : > { %613 = vmatpush2.bf16.msra.mxu0 %v582_v15  ;;  %1204 = vmatpush2.bf16.msra.mxu1 %v582_v15 }
  0x37   : > { %614 = vmatprep.subr.bf16.mxu0 %v1401_v1  ;;  %1195 = vmatprep.subr.bf16.mxu1 %v1401_v1 }
  0x3a   : > { %615 = vmatpush2.bf16.msra.mxu0 %v1274_v16  ;;  %1205 = vmatpush2.bf16.msra.mxu1 %v1274_v16 }
  0x3d   : > { %617 = vmatmul.mubr.bf16.vlgmr.msra.gmra.mxu0 %v1275_v17  ;;  %681 = vmatmul.mubr.bf16.vlgmr.msra.gmra.mxu1 %v1278_v18 }
  0x3e   : > { %1100 = vmatprep.mubr.msk.bf16.mxu0 %vm528_vm0, %v1281_v19  ;;  %1108 = vmatprep.mubr.msk.bf16.mxu1 %vm528_vm0, %v1283_v20 }
  0x45   : > { %625 = vmatmul.mubr.bf16.gmra.mxu0 %v1285_v21  ;;  %689 = vmatmul.mubr.bf16.gmra.mxu1 %v1286_v22 }
  0x46   : > { %1101 = vmatprep.mubr.msk.bf16.mxu0 %vm528_vm0, %v1287_v23  ;;  %1109 = vmatprep.mubr.msk.bf16.mxu1 %vm528_vm0, %v1289_v24 }
  0x4d   : > { %633 = vmatmul.mubr.bf16.gmra.mxu0 %v1291_v25  ;;  %697 = vmatmul.mubr.bf16.gmra.mxu1 %v1292_v26 }
  0x4e   : > { %1102 = vmatprep.mubr.msk.bf16.mxu0 %vm528_vm0, %v1293_v27  ;;  %1110 = vmatprep.mubr.msk.bf16.mxu1 %vm528_vm0, %v1295_v28 }
  0x55   : > { %641 = vmatmul.mubr.bf16.gmra.mxu0 %v1297_v29  ;;  %705 = vmatmul.mubr.bf16.gmra.mxu1 %v1298_v30 }
  0x56   : > { %1103 = vmatprep.mubr.msk.bf16.mxu0 %vm528_vm0, %v1299_v31  ;;  %1111 = vmatprep.mubr.msk.bf16.mxu1 %vm528_vm0, %v1301_v32 }
  0x5d   : > { %649 = vmatmul.mubr.bf16.gmra.mxu0 %v1303_v33  ;;  %713 = vmatmul.mubr.bf16.gmra.mxu1 %v1304_v34 }
  0x5e   : > { %1104 = vmatprep.mubr.msk.bf16.mxu0 %vm528_vm0, %v1305_v35  ;;  %1112 = vmatprep.mubr.msk.bf16.mxu1 %vm528_vm0, %v1307_v36 }
  0x65   : > { %657 = vmatmul.mubr.bf16.gmra.mxu0 %v1309_v37  ;;  %721 = vmatmul.mubr.bf16.gmra.mxu1 %v1310_v38 }
  0x66   : > { %1105 = vmatprep.mubr.msk.bf16.mxu0 %vm528_vm0, %v1311_v39  ;;  %1113 = vmatprep.mubr.msk.bf16.mxu1 %vm528_vm0, %v1313_v40 }
  0x6d   : > { %665 = vmatmul.mubr.bf16.gmra.mxu0 %v1315_v41  ;;  %729 = vmatmul.mubr.bf16.gmra.mxu1 %v1316_v42 }
  0x6e   : > { %1106 = vmatprep.mubr.msk.bf16.mxu0 %vm528_vm0, %v1317_v43  ;;  %1114 = vmatprep.mubr.msk.bf16.mxu1 %vm528_vm0, %v1319_v44 }
  0x75   : > { %673 = vmatmul.mubr.bf16.gmra.mxu0 %v1321_v45  ;;  %737 = vmatmul.mubr.bf16.gmra.mxu1 %v1322_v46 }
  0xfd   : > { %v618_v48 = vpop.f32.mrf.mxu0  ;;  %v682_v49 = vpop.f32.mrf.mxu1 }
  0xfe   : > { %v619_v50 = vadd.f32 %v1569_v47, %v618_v48  ;;  %v683_v51 = vadd.f32 %v1569_v47, %v682_v49 }
  0xff   : > { %v620_v52 = vpop.f32.mrf.mxu0  ;;  %v684_v53 = vpop.f32.mrf.mxu1 }
 0x100   : > { %v1153_v54 = vpack.c.bf16 %v619_v50, %v619_v50  ;;  %v1169_v55 = vpack.c.bf16 %v683_v51, %v683_v51 }
 0x101   : > { %v621_v56 = vpop.f32.mrf.mxu0  ;;  %v685_v57 = vpop.f32.mrf.mxu1 }
 0x102   : > { %874 = vst.msk [vmem:[%s1575_s11] sm:$0xf] %vm873_vm3, %v1153_v54  ;;  %890 = vst.msk [vmem:[%s1575_s11 + $0x40] sm:$0xf] %vm873_vm3, %v1169_v55  ;;  %v622_v58 = vadd.f32 %v1569_v47, %v621_v56  ;;  %v686_v59 = vadd.f32 %v1569_v47, %v685_v57 }
 0x103   : > { %v623_v60 = vpop.f32.mrf.mxu0  ;;  %v687_v61 = vpop.f32.mrf.mxu1 }
 0x104   : > { %v1154_v62 = vpack.c.bf16 %v622_v58, %v622_v58  ;;  %v1170_v63 = vpack.c.bf16 %v686_v59, %v686_v59 }
 0x105   : > { %v626_v0 = vpop.f32.mrf.mxu0  ;;  %v690_v1 = vpop.f32.mrf.mxu1 }
 0x106   : > { %875 = vst.msk [vmem:[%s1575_s11 + $0x4] sm:$0xf] %vm873_vm3, %v1154_v62  ;;  %891 = vst.msk [vmem:[%s1575_s11 + $0x44] sm:$0xf] %vm873_vm3, %v1170_v63  ;;  %v627_v2 = vadd.f32 %v1569_v47, %v626_v0  ;;  %v691_v3 = vadd.f32 %v1569_v47, %v690_v1 }
 0x107   : > { %v628_v4 = vpop.f32.mrf.mxu0  ;;  %v692_v5 = vpop.f32.mrf.mxu1 }
 0x108   : > { %v1155_v6 = vpack.c.bf16 %v627_v2, %v627_v2  ;;  %v1171_v7 = vpack.c.bf16 %v691_v3, %v691_v3 }
 0x109   : > { %v629_v8 = vpop.f32.mrf.mxu0  ;;  %v693_v9 = vpop.f32.mrf.mxu1 }
 0x10a   : > { %876 = vst.msk [vmem:[%s1575_s11 + $0x8] sm:$0xf] %vm873_vm3, %v1155_v6  ;;  %892 = vst.msk [vmem:[%s1575_s11 + $0x48] sm:$0xf] %vm873_vm3, %v1171_v7  ;;  %v630_v10 = vadd.f32 %v1569_v47, %v629_v8  ;;  %v694_v11 = vadd.f32 %v1569_v47, %v693_v9 }
 0x10b   : > { %v631_v12 = vpop.f32.mrf.mxu0  ;;  %v695_v13 = vpop.f32.mrf.mxu1 }
 0x10c   : > { %v1156_v14 = vpack.c.bf16 %v630_v10, %v630_v10  ;;  %v1172_v15 = vpack.c.bf16 %v694_v11, %v694_v11 }
 0x10d   : > { %v634_v16 = vpop.f32.mrf.mxu0  ;;  %v698_v17 = vpop.f32.mrf.mxu1 }
 0x10e   : > { %877 = vst.msk [vmem:[%s1575_s11 + $0xc] sm:$0xf] %vm873_vm3, %v1156_v14  ;;  %893 = vst.msk [vmem:[%s1575_s11 + $0x4c] sm:$0xf] %vm873_vm3, %v1172_v15  ;;  %v635_v18 = vadd.f32 %v1569_v47, %v634_v16  ;;  %v699_v19 = vadd.f32 %v1569_v47, %v698_v17 }
 0x10f   : > { %v636_v20 = vpop.f32.mrf.mxu0  ;;  %v700_v21 = vpop.f32.mrf.mxu1 }
 0x110   : > { %v1157_v22 = vpack.c.bf16 %v635_v18, %v635_v18  ;;  %v1173_v23 = vpack.c.bf16 %v699_v19, %v699_v19 }
 0x111   : > { %v637_v24 = vpop.f32.mrf.mxu0  ;;  %v701_v25 = vpop.f32.mrf.mxu1 }
 0x112   : > { %878 = vst.msk [vmem:[%s1575_s11 + $0x10] sm:$0xf] %vm873_vm3, %v1157_v22  ;;  %894 = vst.msk [vmem:[%s1575_s11 + $0x50] sm:$0xf] %vm873_vm3, %v1173_v23  ;;  %v638_v26 = vadd.f32 %v1569_v47, %v637_v24  ;;  %v702_v27 = vadd.f32 %v1569_v47, %v701_v25 }
 0x113   : > { %v639_v28 = vpop.f32.mrf.mxu0  ;;  %v703_v29 = vpop.f32.mrf.mxu1 }
 0x114   : > { %v1158_v30 = vpack.c.bf16 %v638_v26, %v638_v26  ;;  %v1174_v31 = vpack.c.bf16 %v702_v27, %v702_v27 }
 0x115   : > { %v642_v32 = vpop.f32.mrf.mxu0  ;;  %v706_v33 = vpop.f32.mrf.mxu1 }
 0x116   : > { %879 = vst.msk [vmem:[%s1575_s11 + $0x14] sm:$0xf] %vm873_vm3, %v1158_v30  ;;  %895 = vst.msk [vmem:[%s1575_s11 + $0x54] sm:$0xf] %vm873_vm3, %v1174_v31  ;;  %v643_v34 = vadd.f32 %v1569_v47, %v642_v32  ;;  %v707_v35 = vadd.f32 %v1569_v47, %v706_v33 }
 0x117   : > { %v644_v36 = vpop.f32.mrf.mxu0  ;;  %v708_v37 = vpop.f32.mrf.mxu1 }
 0x118   : > { %v1159_v38 = vpack.c.bf16 %v643_v34, %v643_v34  ;;  %v1175_v39 = vpack.c.bf16 %v707_v35, %v707_v35 }
 0x119   : > { %v645_v40 = vpop.f32.mrf.mxu0  ;;  %v709_v41 = vpop.f32.mrf.mxu1 }
 0x11a   : > { %880 = vst.msk [vmem:[%s1575_s11 + $0x18] sm:$0xf] %vm873_vm3, %v1159_v38  ;;  %896 = vst.msk [vmem:[%s1575_s11 + $0x58] sm:$0xf] %vm873_vm3, %v1175_v39  ;;  %v646_v42 = vadd.f32 %v1569_v47, %v645_v40  ;;  %v710_v43 = vadd.f32 %v1569_v47, %v709_v41 }
 0x11b   : > { %v647_v44 = vpop.f32.mrf.mxu0  ;;  %v711_v45 = vpop.f32.mrf.mxu1 }
 0x11c   : > { %v1160_v46 = vpack.c.bf16 %v646_v42, %v646_v42  ;;  %v1176_v48 = vpack.c.bf16 %v710_v43, %v710_v43 }
 0x11d   : > { %v650_v49 = vpop.f32.mrf.mxu0  ;;  %v714_v50 = vpop.f32.mrf.mxu1 }
 0x11e   : > { %881 = vst.msk [vmem:[%s1575_s11 + $0x1c] sm:$0xf] %vm873_vm3, %v1160_v46  ;;  %897 = vst.msk [vmem:[%s1575_s11 + $0x5c] sm:$0xf] %vm873_vm3, %v1176_v48  ;;  %v651_v51 = vadd.f32 %v1569_v47, %v650_v49  ;;  %v715_v52 = vadd.f32 %v1569_v47, %v714_v50 }
 0x11f   : > { %v652_v53 = vpop.f32.mrf.mxu0  ;;  %v716_v54 = vpop.f32.mrf.mxu1 }
 0x120   : > { %v1161_v55 = vpack.c.bf16 %v651_v51, %v651_v51  ;;  %v1177_v56 = vpack.c.bf16 %v715_v52, %v715_v52 }
 0x121   : > { %v653_v57 = vpop.f32.mrf.mxu0  ;;  %v717_v58 = vpop.f32.mrf.mxu1 }
 0x122   : > { %882 = vst.msk [vmem:[%s1575_s11 + $0x20] sm:$0xf] %vm873_vm3, %v1161_v55  ;;  %898 = vst.msk [vmem:[%s1575_s11 + $0x60] sm:$0xf] %vm873_vm3, %v1177_v56  ;;  %v654_v59 = vadd.f32 %v1569_v47, %v653_v57  ;;  %v718_v60 = vadd.f32 %v1569_v47, %v717_v58 }
 0x123   : > { %v655_v61 = vpop.f32.mrf.mxu0  ;;  %v719_v62 = vpop.f32.mrf.mxu1 }
 0x124   : > { %v1162_v63 = vpack.c.bf16 %v654_v59, %v654_v59  ;;  %v1178_v0 = vpack.c.bf16 %v718_v60, %v718_v60 }
 0x125   : > { %v658_v1 = vpop.f32.mrf.mxu0  ;;  %v722_v2 = vpop.f32.mrf.mxu1 }
 0x126   : > { %883 = vst.msk [vmem:[%s1575_s11 + $0x24] sm:$0xf] %vm873_vm3, %v1162_v63  ;;  %899 = vst.msk [vmem:[%s1575_s11 + $0x64] sm:$0xf] %vm873_vm3, %v1178_v0  ;;  %v659_v3 = vadd.f32 %v1569_v47, %v658_v1  ;;  %v723_v4 = vadd.f32 %v1569_v47, %v722_v2 }
 0x127   : > { %v660_v5 = vpop.f32.mrf.mxu0  ;;  %v724_v6 = vpop.f32.mrf.mxu1 }
 0x128   : > { %v1163_v7 = vpack.c.bf16 %v659_v3, %v659_v3  ;;  %v1179_v8 = vpack.c.bf16 %v723_v4, %v723_v4 }
 0x129   : > { %v661_v9 = vpop.f32.mrf.mxu0  ;;  %v725_v10 = vpop.f32.mrf.mxu1 }
 0x12a   : > { %884 = vst.msk [vmem:[%s1575_s11 + $0x28] sm:$0xf] %vm873_vm3, %v1163_v7  ;;  %900 = vst.msk [vmem:[%s1575_s11 + $0x68] sm:$0xf] %vm873_vm3, %v1179_v8  ;;  %v662_v11 = vadd.f32 %v1569_v47, %v661_v9  ;;  %v726_v12 = vadd.f32 %v1569_v47, %v725_v10 }
 0x12b   : > { %v663_v13 = vpop.f32.mrf.mxu0  ;;  %v727_v14 = vpop.f32.mrf.mxu1 }
 0x12c   : > { %v1164_v15 = vpack.c.bf16 %v662_v11, %v662_v11  ;;  %v1180_v16 = vpack.c.bf16 %v726_v12, %v726_v12 }
 0x12d   : > { %v666_v17 = vpop.f32.mrf.mxu0  ;;  %v730_v18 = vpop.f32.mrf.mxu1 }
 0x12e   : > { %885 = vst.msk [vmem:[%s1575_s11 + $0x2c] sm:$0xf] %vm873_vm3, %v1164_v15  ;;  %901 = vst.msk [vmem:[%s1575_s11 + $0x6c] sm:$0xf] %vm873_vm3, %v1180_v16  ;;  %v667_v19 = vadd.f32 %v1569_v47, %v666_v17  ;;  %v731_v20 = vadd.f32 %v1569_v47, %v730_v18 }
 0x12f   : > { %v668_v21 = vpop.f32.mrf.mxu0  ;;  %v732_v22 = vpop.f32.mrf.mxu1 }
 0x130   : > { %v1165_v23 = vpack.c.bf16 %v667_v19, %v667_v19  ;;  %v1181_v24 = vpack.c.bf16 %v731_v20, %v731_v20 }
 0x131   : > { %v669_v25 = vpop.f32.mrf.mxu0  ;;  %v733_v26 = vpop.f32.mrf.mxu1 }
 0x132   : > { %886 = vst.msk [vmem:[%s1575_s11 + $0x30] sm:$0xf] %vm873_vm3, %v1165_v23  ;;  %902 = vst.msk [vmem:[%s1575_s11 + $0x70] sm:$0xf] %vm873_vm3, %v1181_v24  ;;  %v670_v27 = vadd.f32 %v1569_v47, %v669_v25  ;;  %v734_v28 = vadd.f32 %v1569_v47, %v733_v26 }
 0x133   : > { %v671_v29 = vpop.f32.mrf.mxu0  ;;  %v735_v30 = vpop.f32.mrf.mxu1 }
 0x134   : > { %v1166_v31 = vpack.c.bf16 %v670_v27, %v670_v27  ;;  %v1182_v32 = vpack.c.bf16 %v734_v28, %v734_v28 }
 0x135   : > { %v674_v33 = vpop.f32.mrf.mxu0  ;;  %v738_v34 = vpop.f32.mrf.mxu1 }
 0x136   : > { %887 = vst.msk [vmem:[%s1575_s11 + $0x34] sm:$0xf] %vm873_vm3, %v1166_v31  ;;  %903 = vst.msk [vmem:[%s1575_s11 + $0x74] sm:$0xf] %vm873_vm3, %v1182_v32  ;;  %v675_v35 = vadd.f32 %v1569_v47, %v674_v33  ;;  %v739_v36 = vadd.f32 %v1569_v47, %v738_v34 }
 0x137   : > { %v676_v37 = vpop.f32.mrf.mxu0  ;;  %v740_v38 = vpop.f32.mrf.mxu1 }
 0x138   : > { %v1167_v39 = vpack.c.bf16 %v675_v35, %v675_v35  ;;  %v1183_v40 = vpack.c.bf16 %v739_v36, %v739_v36 }
 0x139   : > { %v677_v41 = vpop.f32.mrf.mxu0  ;;  %v741_v42 = vpop.f32.mrf.mxu1 }
 0x13a   : > { %888 = vst.msk [vmem:[%s1575_s11 + $0x38] sm:$0xf] %vm873_vm3, %v1167_v39  ;;  %904 = vst.msk [vmem:[%s1575_s11 + $0x78] sm:$0xf] %vm873_vm3, %v1183_v40  ;;  %v678_v43 = vadd.f32 %v1569_v47, %v677_v41  ;;  %v742_v44 = vadd.f32 %v1569_v47, %v741_v42 }
 0x13b   : > { %v679_v45 = vpop.f32.mrf.mxu0  ;;  %v743_v46 = vpop.f32.mrf.mxu1 }
 0x13c   : > { %v1168_v48 = vpack.c.bf16 %v678_v43, %v678_v43  ;;  %v1184_v49 = vpack.c.bf16 %v742_v44, %v742_v44 }
 0x13e   : > { %889 = vst.msk [vmem:[%s1575_s11 + $0x3c] sm:$0xf] %vm873_vm3, %v1168_v48  ;;  %905 = vst.msk [vmem:[%s1575_s11 + $0x7c] sm:$0xf] %vm873_vm3, %v1184_v49 }
 0x13f   : > { %1336 = shalt.err (!%p1333_p5)
}
 0x140   : > { %s1337_s4 = scalar_lea.hbm %s1672_s26, 2048  ;;  %s1341_s7 = scalar_lea.hbm %s1730_s3, 8192 }
 0x141   : > { %p1338_p6 = scmp.ne.s32.totalorder %s1672_s26, %s1337_s4  ;;  %p1342_p10 = scmp.lt.s32.totalorder %s1672_s26, %s1730_s3 }
 0x142   : > { %p1343_p11 = scmp.lt.s32.totalorder %s1341_s7, %s1337_s4 }
 0x143   : > { %p1339_p7 = pnand %p1338_p6, %p1466_p4 }
 0x144   : > { %p1344_p12 = por %p1343_p11, %p1342_p10 }
 0x145   : > { %p1340_p9 = pneg %p1339_p7 }
 0x147   : > { %p1345_p13 = pnand %p1344_p12, %p1340_p9 }
 0x149   : > { %1348 = shalt.err (!%p1345_p13)
}
 0x14a   : > { %s1404_s10 = smov 64   ;;  %s1405_s11 = smov 4  }
 0x14b   : > { %1206 = dma.vmem_to_hbm [thread:$0]  (%p1466_p4), %s1674_s19, 2048, %s1672_s26, %s1682_s15, %s1404_s10, %s1404_s10, %s1405_s11  }
 0x14c PF: > { %p1212_p0 = scmp.ge.s32.totalorder %s1399_s17, 2  ;;  %s938_s18 = sand.u32 1, %s1379_s12  }
 0x14d   : > { %s939_s21 = scalar_lea.sflag [#allocation3], %s938_s18 }
 0x14e   : > { %p1209_p1 = pnand %p1212_p0, %p1473_p8 }
 0x150   : > { %p1210_p2 = pneg %p1209_p1 }
 0x152   : > { %1374 = dma.done.wait (%p1210_p2), %s939_s21, 2048  }
 0x153   : > { %1376 = vsyncadd (%p1210_p2), %s939_s21, 4294965248  ;;  %s16_s17 = sadd.s32 1, %s1399_s17   ;;  %s1733_s12 = smov %s1383_s13 }
 0x154   : > { %p13_p3 = scmp.ge.s32.totalorder %s16_s17, 6   ;;  %s1734_s13 = smov %s1387_s14 }
 0x155   : > { %s1735_s14 = smov %s1479_s25  ;;  %s1736_s15 = smov %s1395_s16 }
 0x156   : > { %s1737_s16 = smov %s1739_s20  ;;  %15 = sbr.rel (!%p13_p3) target bundleno = 4 (0x4), region = 73 }
 0x15b   :  { %944 = vsyncpa [#allocation3], 1 }
 0x15c   :  { %946 = vsyncpa [#allocation3 + $0x1], 1 }

</bundles_post_ra>
